<compile_context>
chip_gen: v7x
topology: tpu7x:2x2x1
jax: 0.10.0
libtpu: 0.0.40
codegen_flags: <defaults>
</compile_context>

<pallas_src>
import functools

import jax
import jax.numpy as jnp
from jax.experimental import pallas as pl
from jax.experimental.pallas import tpu as pltpu

NEG_SLOPE = 0.01                  # PyTorch nn.LeakyReLU default
COMPUTE_DTYPE = jnp.bfloat16      # MXU fast path (f32 accumulation in-kernel)
ROW_TILE = 8192                   # lane-axis tile of M = N*H*W (multiple of 128)
SINGLE_TILE_MAX = 2048            # below this use one tile (grid overhead dominates)
VMEM_LIMIT_BYTES = 48 * 1024 * 1024


def _cdiv(a, b):
    return -(-a // b)


def _leaky_relu(y):
    return jnp.where(y >= 0, y, NEG_SLOPE * y)


# ---------------------------------------------------------------------------
# Pallas kernels
# ---------------------------------------------------------------------------
def _dense_fused_kernel(*refs):
    """All dense layers fused in one kernel; weights stay VMEM-resident.

    refs = (x, w0, b0, w1, b1, ..., out).  LeakyReLU after every layer
    (DenseModel(last_activation='same')).
    """
    x_ref, o_ref = refs[0], refs[-1]
    n_layers = (len(refs) - 2) // 2
    h = x_ref[...].astype(jnp.float32)
    for i in range(n_layers):
        w = refs[1 + 2 * i][...]
        b = refs[2 + 2 * i][...]
        h = jnp.dot(h, w, preferred_element_type=jnp.float32) + b
        h = _leaky_relu(h)
    o_ref[...] = h.astype(o_ref.dtype)


def _convt_kernel(hm_ref, hh_ref, mk_ref, w_ref, b_ref, o_ref, *,
                  w_spatial, apply_act):
    """Polyphase ConvTranspose2d block; taps built in VMEM (no HBM im2col).

    hm_ref: (Cin, TM)           main lane-dense tile of the flat (Cin, M) map
    hh_ref: (Cin, HALO)         halo columns just past this tile
    mk_ref: (2, TM)             row 0: i-boundary mask, row 1: j-boundary mask
    w_ref:  (4, 4*Cout, Cin)    pre-folded polyphase weights (VMEM-resident)
    b_ref:  (4*Cout, 1)         f32 bias (repeated per output phase)
    o_ref:  (4*Cout, TM)        phase-major output, lane-dense in M
    """
    hm = hm_ref[...]                                    # (Cin, TM)
    hx = jnp.concatenate([hm, hh_ref[...]], axis=1)     # (Cin, TM + HALO)
    tm = hm.shape[1]
    mk = mk_ref[...]
    mi = mk[0:1, :]                                     # i + 1 < H
    mj = mk[1:2, :]                                     # j + 1 < W

    # taps (dr, dc) in order (0,0), (0,1), (1,0), (1,1); flat shift dr*W + dc.
    taps = (
        hm,
        hx[:, 1:1 + tm] * mj,
        hx[:, w_spatial:w_spatial + tm] * mi,
        hx[:, w_spatial + 1:w_spatial + 1 + tm] * (mi * mj),
    )
    acc = None
    for k in range(4):
        part = jnp.dot(w_ref[k], taps[k], preferred_element_type=jnp.float32)
        acc = part if acc is None else acc + part
    y = acc + b_ref[...]
    if apply_act:
        y = _leaky_relu(y)
    o_ref[...] = y.astype(o_ref.dtype)


# ---------------------------------------------------------------------------
# Wrappers
# ---------------------------------------------------------------------------
def dense_forward(x, dense_params):
    args = [x.astype(jnp.float32)]
    for w, b in dense_params:
        args += [w, b]
    out_dim = dense_params[-1][0].shape[1]
    return pl.pallas_call(
        _dense_fused_kernel,
        out_shape=jax.ShapeDtypeStruct((x.shape[0], out_dim), jnp.float32),
    )(*args)


def conv_transpose_block(h2d, w4, b4, n_batch, h_in, w_in, apply_act, out_dtype,
                         row_tile=ROW_TILE, single_tile_max=SINGLE_TILE_MAX):
    """ConvTranspose2d(k=3, s=2, p=1, output_padding=1) [+ LeakyReLU].

    h2d: flat channel-first activations (Cin, M) with M = N*H*W lane-dense.
    Returns (Cout, N, 2H, 2W).
    """
    cin, m_cols = h2d.shape
    cout = w4.shape[1] // 4
    r4 = 4 * cout
    assert m_cols == n_batch * h_in * w_in

    # Tiling: halo block must cover the largest flat shift (w_in + 1).
    halo = 128 * _cdiv(w_in + 1, 128)
    if m_cols <= single_tile_max:
        tm = halo * _cdiv(m_cols, halo)                 # single full-M tile
    else:
        tgt = min(row_tile, _cdiv(m_cols, 2))           # >=2 tiles (v7x megacore)
        tm = halo * _cdiv(tgt, halo)
    g = _cdiv(m_cols, tm)
    mp = g * tm
    tmb = tm // halo                                    # tile width in halo blocks

    h_pad = jnp.pad(h2d.astype(COMPUTE_DTYPE),
                    ((0, 0), (0, mp + halo - m_cols)))  # zero tail + halo slab

    # Boundary masks (computed in XLA; streamed as 2 bf16 rows).
    pos = jnp.arange(mp, dtype=jnp.int32)
    i_idx = (pos // w_in) % h_in
    j_idx = pos % w_in
    masks = jnp.stack([i_idx < h_in - 1, j_idx < w_in - 1]).astype(COMPUTE_DTYPE)

    cost = pl.CostEstimate(
        flops=2 * mp * (4 * cin) * r4,
        transcendentals=0,
        bytes_accessed=int(h_pad.size * h_pad.dtype.itemsize
                           + masks.size * masks.dtype.itemsize
                           + w4.size * w4.dtype.itemsize + b4.size * 4
                           + r4 * mp * jnp.dtype(out_dtype).itemsize))

    y = pl.pallas_call(
        functools.partial(_convt_kernel, w_spatial=w_in, apply_act=apply_act),
        grid=(g,),
        in_specs=[
            pl.BlockSpec((cin, tm), lambda i: (0, i)),              # main tile
            pl.BlockSpec((cin, halo), lambda i: (0, (i + 1) * tmb)),  # halo
            pl.BlockSpec((2, tm), lambda i: (0, i)),                # masks
            pl.BlockSpec((4, r4, cin), lambda i: (0, 0, 0)),        # weights
            pl.BlockSpec((r4, 1), lambda i: (0, 0)),                # bias
        ],
        out_specs=pl.BlockSpec((r4, tm), lambda i: (0, i)),
        out_shape=jax.ShapeDtypeStruct((r4, mp), out_dtype),
        compiler_params=pltpu.CompilerParams(
            dimension_semantics=("parallel",),
            vmem_limit_bytes=VMEM_LIMIT_BYTES),
        cost_estimate=cost,
    )(h_pad, h_pad, masks, w4, b4)

    # Pixel shuffle (depth-to-space), channel-first, as one XLA transpose pass:
    # out[co, n, 2i+r, 2j+c] = y[(r, c, co), n, i, j]
    y = y[:, :m_cols].reshape(2, 2, cout, n_batch, h_in, w_in)
    y = jnp.transpose(y, (2, 3, 4, 0, 5, 1))
    return y.reshape(cout, n_batch, 2 * h_in, 2 * w_in)


def conv_decoder_forward(x, prepared, reshape,
                         row_tile=ROW_TILE, single_tile_max=SINGLE_TILE_MAX):
    """x: (N, num_features[0]) latent -> (N, num_channels[-1], H_out, W_out)."""
    h = dense_forward(x, prepared["dense"])

    # x.view(-1, C, H, W) then channel-first flat (C, N*H*W); cheap on the tiny
    # latent map (the costly NHWC<->NCHW lane move never happens anywhere).
    c0, h_cur, w_cur = reshape
    n_batch = h.shape[0]
    h2d = (h.reshape(n_batch, c0, h_cur * w_cur)
            .transpose(1, 0, 2)
            .reshape(c0, n_batch * h_cur * w_cur)
            .astype(COMPUTE_DTYPE))

    n_blocks = len(prepared["conv"])
    h4 = None
    for i, (w4, b4) in enumerate(prepared["conv"]):
        is_last = i == n_blocks - 1
        h4 = conv_transpose_block(
            h2d, w4, b4, n_batch, h_cur, w_cur,
            apply_act=not is_last,
            out_dtype=jnp.float32 if is_last else COMPUTE_DTYPE,
            row_tile=row_tile, single_tile_max=single_tile_max)
        h_cur, w_cur = 2 * h_cur, 2 * w_cur
        c_out = h4.shape[0]
        h2d = h4.reshape(c_out, n_batch * h_cur * w_cur)   # contiguous, free

    # channel-first -> PyTorch NCHW output (leading-axes swap only).
    return jnp.transpose(h4, (1, 0, 2, 3))


# ---------------------------------------------------------------------------
# Parameter preparation (hoisted: weight folding done once, not per forward)
# ---------------------------------------------------------------------------
def prepare_params(params):
    """Fold torch-layout weights into kernel-ready polyphase matrices."""
    prepared = {"dense": [], "conv": []}
    for w, b in params["dense"]:
        prepared["dense"].append((w.astype(jnp.float32),
                                  b.reshape(1, -1).astype(jnp.float32)))
    for w, b in params["conv"]:             # w: (Cin, Cout, 3, 3) torch layout
        cin, cout, kh, kw = w.shape
        assert (kh, kw) == (3, 3)
        # Output phase (r, c) / tap (dr, dc) reads torch weight
        # [1 + r - 2*dr, 1 + c - 2*dc]  (zero outside the 3x3 support).
        w_sub = jnp.zeros((2, 2, cout, 2, 2, cin), jnp.float32)
        for r in (0, 1):
            for c in (0, 1):
                for dr in (0, 1):
                    for dc in (0, 1):
                        a, bb = 1 + r - 2 * dr, 1 + c - 2 * dc
                        if 0 <= a < 3 and 0 <= bb < 3:
                            w_sub = w_sub.at[r, c, :, dr, dc, :].set(
                                w[:, :, a, bb].T)
        # (r,c,co,dr,dc,ci) -> (dr,dc,r,c,co,ci) -> (4, 4*Cout, Cin)
        w4 = jnp.transpose(w_sub, (3, 4, 0, 1, 2, 5)).reshape(
            4, 4 * cout, cin).astype(COMPUTE_DTYPE)
        b4 = jnp.tile(b, 4).reshape(4 * cout, 1).astype(jnp.float32)
        prepared["conv"].append((w4, b4))
    return prepared


# ---------------------------------------------------------------------------
# Pure-XLA reference (dilate + pad formulation) for a correctness check
# ---------------------------------------------------------------------------
def reference_forward(x, params, reshape):
    h = x
    for w, b in params["dense"]:
        h = _leaky_relu(h @ w + b)
    c0, hh, ww = reshape
    h = h.reshape(-1, c0, hh, ww)
    n = len(params["conv"])
    for i, (w, b) in enumerate(params["conv"]):
        w_oihw = jnp.transpose(w[:, :, ::-1, ::-1], (1, 0, 2, 3))
        h = jax.lax.conv_general_dilated(
            h, w_oihw, window_strides=(1, 1), padding=((1, 2), (1, 2)),
            lhs_dilation=(2, 2), dimension_numbers=("NCHW", "OIHW", "NCHW"),
            precision=jax.lax.Precision.HIGHEST,
            preferred_element_type=jnp.float32)
        h = h + b.reshape(1, -1, 1, 1)
        if i != n - 1:
            h = _leaky_relu(h)
    return h


# ---------------------------------------------------------------------------
# Deterministic parameter construction + demo run
# ---------------------------------------------------------------------------
def init_params(key, num_features, num_channels, kernel_size=3):
    params = {"dense": [], "conv": []}
    for fin, fout in zip(num_features[:-1], num_features[1:]):
        key, kw_, kb_ = jax.random.split(key, 3)
        params["dense"].append(
            (0.1 * jax.random.normal(kw_, (fin, fout), jnp.float32),
             0.1 * jax.random.normal(kb_, (fout,), jnp.float32)))
    for cin, cout in zip(num_channels[:-1], num_channels[1:]):
        key, kw_, kb_ = jax.random.split(key, 3)
        # torch ConvTranspose2d weight layout: (Cin, Cout, KH, KW)
        params["conv"].append(
            (0.1 * jax.random.normal(
                kw_, (cin, cout, kernel_size, kernel_size), jnp.float32),
             0.1 * jax.random.normal(kb_, (cout,), jnp.float32)))
    return params


if __name__ == "__main__":
    key = jax.random.PRNGKey(0)

    # ---- test 1: tiny decoder (single-tile path) -------------------------
    # latent 16 -> dense 32 -> dense 64 -> view (4,4,4) -> convT 8@8x8 -> convT 3@16x16
    num_features = [16, 32, 64]
    reshape = (4, 4, 4)            # (C, H, W); prod == num_features[-1]
    num_channels = [4, 8, 3]       # num_channels[0] == reshape[0]
    batch = 2

    key, kp, kx = jax.random.split(key, 3)
    params = init_params(kp, num_features, num_channels)
    prepared = prepare_params(params)
    x = jax.random.normal(kx, (batch, num_features[0]), jnp.float32)

    fwd = jax.jit(functools.partial(conv_decoder_forward, reshape=reshape))
    out = jax.block_until_ready(fwd(x, prepared))

    expected_shape = (batch, num_channels[-1],
                      reshape[1] * 2 ** (len(num_channels) - 1),
                      reshape[2] * 2 ** (len(num_channels) - 1))
    assert out.shape == expected_shape, (out.shape, expected_shape)
    assert bool(jnp.all(jnp.isfinite(out)))
    ref = reference_forward(x, params, reshape)
    assert jnp.allclose(out, ref, rtol=5e-2, atol=3e-2), float(
        jnp.max(jnp.abs(out - ref)))

    # ---- test 2: exercise the multi-tile (grid >= 2) halo path -----------
    num_features2 = [16, 64, 256]
    reshape2 = (4, 8, 8)
    num_channels2 = [4, 8, 3]
    batch2 = 8

    key, kp2, kx2 = jax.random.split(key, 3)
    params2 = init_params(kp2, num_features2, num_channels2)
    prepared2 = prepare_params(params2)
    x2 = jax.random.normal(kx2, (batch2, num_features2[0]), jnp.float32)

    fwd2 = jax.jit(functools.partial(conv_decoder_forward, reshape=reshape2,
                                     row_tile=256, single_tile_max=256))
    out2 = jax.block_until_ready(fwd2(x2, prepared2))
    assert out2.shape == (batch2, num_channels2[-1], 32, 32), out2.shape
    ref2 = reference_forward(x2, params2, reshape2)
    assert jnp.allclose(out2, ref2, rtol=5e-2, atol=3e-2), float(
        jnp.max(jnp.abs(out2 - ref2)))

    print("KERNEL_OK")
</pallas_src>

<mosaic_0001>
module attributes {stable_mosaic.version = 11 : i64} {
  func.func @_dense_fused_kernel(%arg0: memref<2x16xf32, #tpu.memory_space<vmem>>, %arg1: memref<16x32xf32, #tpu.memory_space<vmem>>, %arg2: memref<1x32xf32, #tpu.memory_space<vmem>>, %arg3: memref<32x64xf32, #tpu.memory_space<vmem>>, %arg4: memref<1x64xf32, #tpu.memory_space<vmem>>, %arg5: memref<2x64xf32, #tpu.memory_space<vmem>>) attributes {dimension_semantics = [], scalar_prefetch = 0 : i64, scratch_operands = 0 : i64, tpu.core_type = #tpu.core_type<tc>} {
    %c0 = arith.constant 0 : index
    %c0_0 = arith.constant 0 : index
    %0 = vector.load %arg0[%c0, %c0_0] : memref<2x16xf32, #tpu.memory_space<vmem>>, vector<2x16xf32>
    %c0_1 = arith.constant 0 : index
    %c0_2 = arith.constant 0 : index
    %1 = vector.load %arg1[%c0_1, %c0_2] : memref<16x32xf32, #tpu.memory_space<vmem>>, vector<16x32xf32>
    %c0_3 = arith.constant 0 : index
    %c0_4 = arith.constant 0 : index
    %2 = vector.load %arg2[%c0_3, %c0_4] : memref<1x32xf32, #tpu.memory_space<vmem>>, vector<1x32xf32>
    %cst = arith.constant dense<0.000000e+00> : vector<2x32xf32>
    %3 = tpu.matmul %0, %1, %cst {dimension_numbers = #tpu.dot_dimension_numbers<[1], [0], [0], [1], [0, 0, 1, 1], [], []>} : vector<2x16xf32>, vector<16x32xf32>, vector<2x32xf32> -> vector<2x32xf32>
    %4 = vector.broadcast %2 : vector<1x32xf32> to vector<2x32xf32>
    %5 = arith.addf %3, %4 : vector<2x32xf32>
    %cst_5 = arith.constant 0.000000e+00 : f32
    %6 = vector.broadcast %cst_5 : f32 to vector<2x32xf32>
    %7 = arith.cmpf oge, %5, %6 : vector<2x32xf32>
    %cst_6 = arith.constant 0.00999999977 : f32
    %8 = vector.broadcast %cst_6 : f32 to vector<2x32xf32>
    %9 = arith.mulf %8, %5 : vector<2x32xf32>
    %10 = arith.select %7, %5, %9 : vector<2x32xi1>, vector<2x32xf32>
    %c0_7 = arith.constant 0 : index
    %c0_8 = arith.constant 0 : index
    %11 = vector.load %arg3[%c0_7, %c0_8] : memref<32x64xf32, #tpu.memory_space<vmem>>, vector<32x64xf32>
    %c0_9 = arith.constant 0 : index
    %c0_10 = arith.constant 0 : index
    %12 = vector.load %arg4[%c0_9, %c0_10] : memref<1x64xf32, #tpu.memory_space<vmem>>, vector<1x64xf32>
    %cst_11 = arith.constant dense<0.000000e+00> : vector<2x64xf32>
    %13 = tpu.matmul %10, %11, %cst_11 {dimension_numbers = #tpu.dot_dimension_numbers<[1], [0], [0], [1], [0, 0, 1, 1], [], []>} : vector<2x32xf32>, vector<32x64xf32>, vector<2x64xf32> -> vector<2x64xf32>
    %14 = vector.broadcast %12 : vector<1x64xf32> to vector<2x64xf32>
    %15 = arith.addf %13, %14 : vector<2x64xf32>
    %cst_12 = arith.constant 0.000000e+00 : f32
    %16 = vector.broadcast %cst_12 : f32 to vector<2x64xf32>
    %17 = arith.cmpf oge, %15, %16 : vector<2x64xf32>
    %cst_13 = arith.constant 0.00999999977 : f32
    %18 = vector.broadcast %cst_13 : f32 to vector<2x64xf32>
    %19 = arith.mulf %18, %15 : vector<2x64xf32>
    %20 = arith.select %17, %15, %19 : vector<2x64xi1>, vector<2x64xf32>
    %c0_14 = arith.constant 0 : index
    %c0_15 = arith.constant 0 : index
    %21 = vector.load %arg5[%c0_14, %c0_15] : memref<2x64xf32, #tpu.memory_space<vmem>>, vector<2x64xf32>
    tpu.vector_store %arg5[%c0_14, %c0_15], %20 {strides = array<i32>} : memref<2x64xf32, #tpu.memory_space<vmem>>, vector<2x64xf32>,
    return
  }
}

module attributes {stable_mosaic.version = 11 : i64} {
  func.func @_convt_kernel(%arg0: i32, %arg1: memref<4x128xbf16, #tpu.memory_space<vmem>>, %arg2: memref<4x128xbf16, #tpu.memory_space<vmem>>, %arg3: memref<2x128xbf16, #tpu.memory_space<vmem>>, %arg4: memref<4x32x4xbf16, #tpu.memory_space<vmem>>, %arg5: memref<32x1xf32, #tpu.memory_space<vmem>>, %arg6: memref<32x128xbf16, #tpu.memory_space<vmem>>) attributes {dimension_semantics = [#tpu.dimension_semantics<parallel>], iteration_bounds = array<i64: 1>, scalar_prefetch = 0 : i64, scratch_operands = 0 : i64, tpu.core_type = #tpu.core_type<tc>, window_params = [{transform_indices = @transform_0, window_bounds = array<i64: 4, 128>}, {transform_indices = @transform_1, window_bounds = array<i64: 4, 128>}, {transform_indices = @transform_2, window_bounds = array<i64: 2, 128>}, {pipeline_mode = #tpu.pipeline_mode<synchronous>, transform_indices = @transform_3, window_bounds = array<i64: 4, 32, 4>}, {pipeline_mode = #tpu.pipeline_mode<synchronous>, transform_indices = @transform_4, window_bounds = array<i64: 32, 1>}, {transform_indices = @transform_5, window_bounds = array<i64: 32, 128>}]} {
    %c0 = arith.constant 0 : index
    %c0_0 = arith.constant 0 : index
    %0 = vector.load %arg1[%c0, %c0_0] : memref<4x128xbf16, #tpu.memory_space<vmem>>, vector<4x128xbf16>
    %c0_1 = arith.constant 0 : index
    %c0_2 = arith.constant 0 : index
    %1 = vector.load %arg2[%c0_1, %c0_2] : memref<4x128xbf16, #tpu.memory_space<vmem>>, vector<4x128xbf16>
    %2 = tpu.concatenate %0, %1 in 1 : vector<4x128xbf16>, vector<4x128xbf16> -> vector<4x256xbf16>
    %c0_3 = arith.constant 0 : index
    %c0_4 = arith.constant 0 : index
    %3 = vector.load %arg3[%c0_3, %c0_4] : memref<2x128xbf16, #tpu.memory_space<vmem>>, vector<2x128xbf16>
    %4 = vector.extract_strided_slice %3 {offsets = [0, 0], sizes = [1, 128], strides = [1, 1]} : vector<2x128xbf16> to vector<1x128xbf16>
    %5 = vector.extract_strided_slice %3 {offsets = [1, 0], sizes = [1, 128], strides = [1, 1]} : vector<2x128xbf16> to vector<1x128xbf16>
    %6 = vector.extract_strided_slice %2 {offsets = [0, 1], sizes = [4, 128], strides = [1, 1]} : vector<4x256xbf16> to vector<4x128xbf16>
    %7 = vector.broadcast %5 : vector<1x128xbf16> to vector<4x128xbf16>
    %8 = arith.mulf %6, %7 : vector<4x128xbf16>
    %9 = vector.extract_strided_slice %2 {offsets = [0, 4], sizes = [4, 128], strides = [1, 1]} : vector<4x256xbf16> to vector<4x128xbf16>
    %10 = vector.broadcast %4 : vector<1x128xbf16> to vector<4x128xbf16>
    %11 = arith.mulf %9, %10 : vector<4x128xbf16>
    %12 = vector.extract_strided_slice %2 {offsets = [0, 5], sizes = [4, 128], strides = [1, 1]} : vector<4x256xbf16> to vector<4x128xbf16>
    %13 = arith.mulf %4, %5 : vector<1x128xbf16>
    %14 = vector.broadcast %13 : vector<1x128xbf16> to vector<4x128xbf16>
    %15 = arith.mulf %12, %14 : vector<4x128xbf16>
    %c0_5 = arith.constant 0 : index
    %c0_6 = arith.constant 0 : index
    %c0_7 = arith.constant 0 : index
    %16 = vector.load %arg4[%c0_5, %c0_6, %c0_7] : memref<4x32x4xbf16, #tpu.memory_space<vmem>>, vector<1x32x4xbf16>
    %17 = vector.shape_cast %16 : vector<1x32x4xbf16> to vector<32x4xbf16>
    %cst = arith.constant dense<0.000000e+00> : vector<32x128xf32>
    %18 = tpu.matmul %17, %0, %cst {dimension_numbers = #tpu.dot_dimension_numbers<[1], [0], [0], [1], [0, 0, 1, 1], [], []>} : vector<32x4xbf16>, vector<4x128xbf16>, vector<32x128xf32> -> vector<32x128xf32>
    %c1 = arith.constant 1 : index
    %c0_8 = arith.constant 0 : index
    %c0_9 = arith.constant 0 : index
    %19 = vector.load %arg4[%c1, %c0_8, %c0_9] : memref<4x32x4xbf16, #tpu.memory_space<vmem>>, vector<1x32x4xbf16>
    %20 = vector.shape_cast %19 : vector<1x32x4xbf16> to vector<32x4xbf16>
    %cst_10 = arith.constant dense<0.000000e+00> : vector<32x128xf32>
    %21 = tpu.matmul %20, %8, %cst_10 {dimension_numbers = #tpu.dot_dimension_numbers<[1], [0], [0], [1], [0, 0, 1, 1], [], []>} : vector<32x4xbf16>, vector<4x128xbf16>, vector<32x128xf32> -> vector<32x128xf32>
    %22 = arith.addf %18, %21 : vector<32x128xf32>
    %c2 = arith.constant 2 : index
    %c0_11 = arith.constant 0 : index
    %c0_12 = arith.constant 0 : index
    %23 = vector.load %arg4[%c2, %c0_11, %c0_12] : memref<4x32x4xbf16, #tpu.memory_space<vmem>>, vector<1x32x4xbf16>
    %24 = vector.shape_cast %23 : vector<1x32x4xbf16> to vector<32x4xbf16>
    %cst_13 = arith.constant dense<0.000000e+00> : vector<32x128xf32>
    %25 = tpu.matmul %24, %11, %cst_13 {dimension_numbers = #tpu.dot_dimension_numbers<[1], [0], [0], [1], [0, 0, 1, 1], [], []>} : vector<32x4xbf16>, vector<4x128xbf16>, vector<32x128xf32> -> vector<32x128xf32>
    %26 = arith.addf %22, %25 : vector<32x128xf32>
    %c3 = arith.constant 3 : index
    %c0_14 = arith.constant 0 : index
    %c0_15 = arith.constant 0 : index
    %27 = vector.load %arg4[%c3, %c0_14, %c0_15] : memref<4x32x4xbf16, #tpu.memory_space<vmem>>, vector<1x32x4xbf16>
    %28 = vector.shape_cast %27 : vector<1x32x4xbf16> to vector<32x4xbf16>
    %cst_16 = arith.constant dense<0.000000e+00> : vector<32x128xf32>
    %29 = tpu.matmul %28, %15, %cst_16 {dimension_numbers = #tpu.dot_dimension_numbers<[1], [0], [0], [1], [0, 0, 1, 1], [], []>} : vector<32x4xbf16>, vector<4x128xbf16>, vector<32x128xf32> -> vector<32x128xf32>
    %30 = arith.addf %26, %29 : vector<32x128xf32>
    %c0_17 = arith.constant 0 : index
    %c0_18 = arith.constant 0 : index
    %31 = vector.load %arg5[%c0_17, %c0_18] : memref<32x1xf32, #tpu.memory_space<vmem>>, vector<32x1xf32>
    %32 = vector.broadcast %31 : vector<32x1xf32> to vector<32x128xf32>
    %33 = arith.addf %30, %32 : vector<32x128xf32>
    %cst_19 = arith.constant 0.000000e+00 : f32
    %34 = vector.broadcast %cst_19 : f32 to vector<32x128xf32>
    %35 = arith.cmpf oge, %33, %34 : vector<32x128xf32>
    %cst_20 = arith.constant 0.00999999977 : f32
    %36 = vector.broadcast %cst_20 : f32 to vector<32x128xf32>
    %37 = arith.mulf %36, %33 : vector<32x128xf32>
    %38 = arith.select %35, %33, %37 : vector<32x128xi1>, vector<32x128xf32>
    %39 = arith.truncf %38 : vector<32x128xf32> to vector<32x128xbf16>
    %c0_21 = arith.constant 0 : index
    %c0_22 = arith.constant 0 : index
    %40 = vector.load %arg6[%c0_21, %c0_22] : memref<32x128xbf16, #tpu.memory_space<vmem>>, vector<32x128xbf16>
    tpu.vector_store %arg6[%c0_21, %c0_22], %39 {strides = array<i32>} : memref<32x128xbf16, #tpu.memory_space<vmem>>, vector<32x128xbf16>,
    return
  }
  func.func @transform_0(%arg0: i32) -> (i32, i32) {
    %c0_i32 = arith.constant 0 : i32
    %c0_i32_0 = arith.constant 0 : i32
    return %c0_i32, %arg0 : i32, i32
  }
  func.func @transform_1(%arg0: i32) -> (i32, i32) {
    %c1_i32 = arith.constant 1 : i32
    %0 = arith.addi %arg0, %c1_i32 : i32
    %c1_i32_0 = arith.constant 1 : i32
    %1 = arith.muli %0, %c1_i32_0 : i32
    %c0_i32 = arith.constant 0 : i32
    %c0_i32_1 = arith.constant 0 : i32
    return %c0_i32, %1 : i32, i32
  }
  func.func @transform_2(%arg0: i32) -> (i32, i32) {
    %c0_i32 = arith.constant 0 : i32
    %c0_i32_0 = arith.constant 0 : i32
    return %c0_i32, %arg0 : i32, i32
  }
  func.func @transform_3(%arg0: i32) -> (i32, i32, i32) {
    %c0_i32 = arith.constant 0 : i32
    %c0_i32_0 = arith.constant 0 : i32
    %c0_i32_1 = arith.constant 0 : i32
    %c0_i32_2 = arith.constant 0 : i32
    return %c0_i32, %c0_i32_0, %c0_i32_1 : i32, i32, i32
  }
  func.func @transform_4(%arg0: i32) -> (i32, i32) {
    %c0_i32 = arith.constant 0 : i32
    %c0_i32_0 = arith.constant 0 : i32
    %c0_i32_1 = arith.constant 0 : i32
    return %c0_i32, %c0_i32_0 : i32, i32
  }
  func.func @transform_5(%arg0: i32) -> (i32, i32) {
    %c0_i32 = arith.constant 0 : i32
    %c0_i32_0 = arith.constant 0 : i32
    return %c0_i32, %arg0 : i32, i32
  }
}

module attributes {stable_mosaic.version = 11 : i64} {
  func.func @_convt_kernel(%arg0: i32, %arg1: memref<8x128xbf16, #tpu.memory_space<vmem>>, %arg2: memref<8x128xbf16, #tpu.memory_space<vmem>>, %arg3: memref<2x128xbf16, #tpu.memory_space<vmem>>, %arg4: memref<4x12x8xbf16, #tpu.memory_space<vmem>>, %arg5: memref<12x1xf32, #tpu.memory_space<vmem>>, %arg6: memref<12x128xf32, #tpu.memory_space<vmem>>) attributes {dimension_semantics = [#tpu.dimension_semantics<parallel>], iteration_bounds = array<i64: 1>, scalar_prefetch = 0 : i64, scratch_operands = 0 : i64, tpu.core_type = #tpu.core_type<tc>, window_params = [{transform_indices = @transform_0, window_bounds = array<i64: 8, 128>}, {transform_indices = @transform_1, window_bounds = array<i64: 8, 128>}, {transform_indices = @transform_2, window_bounds = array<i64: 2, 128>}, {pipeline_mode = #tpu.pipeline_mode<synchronous>, transform_indices = @transform_3, window_bounds = array<i64: 4, 12, 8>}, {pipeline_mode = #tpu.pipeline_mode<synchronous>, transform_indices = @transform_4, window_bounds = array<i64: 12, 1>}, {transform_indices = @transform_5, window_bounds = array<i64: 12, 128>}]} {
    %c0 = arith.constant 0 : index
    %c0_0 = arith.constant 0 : index
    %0 = vector.load %arg1[%c0, %c0_0] : memref<8x128xbf16, #tpu.memory_space<vmem>>, vector<8x128xbf16>
    %c0_1 = arith.constant 0 : index
    %c0_2 = arith.constant 0 : index
    %1 = vector.load %arg2[%c0_1, %c0_2] : memref<8x128xbf16, #tpu.memory_space<vmem>>, vector<8x128xbf16>
    %2 = tpu.concatenate %0, %1 in 1 : vector<8x128xbf16>, vector<8x128xbf16> -> vector<8x256xbf16>
    %c0_3 = arith.constant 0 : index
    %c0_4 = arith.constant 0 : index
    %3 = vector.load %arg3[%c0_3, %c0_4] : memref<2x128xbf16, #tpu.memory_space<vmem>>, vector<2x128xbf16>
    %4 = vector.extract_strided_slice %3 {offsets = [0, 0], sizes = [1, 128], strides = [1, 1]} : vector<2x128xbf16> to vector<1x128xbf16>
    %5 = vector.extract_strided_slice %3 {offsets = [1, 0], sizes = [1, 128], strides = [1, 1]} : vector<2x128xbf16> to vector<1x128xbf16>
    %6 = vector.extract_strided_slice %2 {offsets = [0, 1], sizes = [8, 128], strides = [1, 1]} : vector<8x256xbf16> to vector<8x128xbf16>
    %7 = vector.broadcast %5 : vector<1x128xbf16> to vector<8x128xbf16>
    %8 = arith.mulf %6, %7 : vector<8x128xbf16>
    %9 = vector.extract_strided_slice %2 {offsets = [0, 8], sizes = [8, 128], strides = [1, 1]} : vector<8x256xbf16> to vector<8x128xbf16>
    %10 = vector.broadcast %4 : vector<1x128xbf16> to vector<8x128xbf16>
    %11 = arith.mulf %9, %10 : vector<8x128xbf16>
    %12 = vector.extract_strided_slice %2 {offsets = [0, 9], sizes = [8, 128], strides = [1, 1]} : vector<8x256xbf16> to vector<8x128xbf16>
    %13 = arith.mulf %4, %5 : vector<1x128xbf16>
    %14 = vector.broadcast %13 : vector<1x128xbf16> to vector<8x128xbf16>
    %15 = arith.mulf %12, %14 : vector<8x128xbf16>
    %c0_5 = arith.constant 0 : index
    %c0_6 = arith.constant 0 : index
    %c0_7 = arith.constant 0 : index
    %16 = vector.load %arg4[%c0_5, %c0_6, %c0_7] : memref<4x12x8xbf16, #tpu.memory_space<vmem>>, vector<1x12x8xbf16>
    %17 = vector.shape_cast %16 : vector<1x12x8xbf16> to vector<12x8xbf16>
    %cst = arith.constant dense<0.000000e+00> : vector<12x128xf32>
    %18 = tpu.matmul %17, %0, %cst {dimension_numbers = #tpu.dot_dimension_numbers<[1], [0], [0], [1], [0, 0, 1, 1], [], []>} : vector<12x8xbf16>, vector<8x128xbf16>, vector<12x128xf32> -> vector<12x128xf32>
    %c1 = arith.constant 1 : index
    %c0_8 = arith.constant 0 : index
    %c0_9 = arith.constant 0 : index
    %19 = vector.load %arg4[%c1, %c0_8, %c0_9] : memref<4x12x8xbf16, #tpu.memory_space<vmem>>, vector<1x12x8xbf16>
    %20 = vector.shape_cast %19 : vector<1x12x8xbf16> to vector<12x8xbf16>
    %cst_10 = arith.constant dense<0.000000e+00> : vector<12x128xf32>
    %21 = tpu.matmul %20, %8, %cst_10 {dimension_numbers = #tpu.dot_dimension_numbers<[1], [0], [0], [1], [0, 0, 1, 1], [], []>} : vector<12x8xbf16>, vector<8x128xbf16>, vector<12x128xf32> -> vector<12x128xf32>
    %22 = arith.addf %18, %21 : vector<12x128xf32>
    %c2 = arith.constant 2 : index
    %c0_11 = arith.constant 0 : index
    %c0_12 = arith.constant 0 : index
    %23 = vector.load %arg4[%c2, %c0_11, %c0_12] : memref<4x12x8xbf16, #tpu.memory_space<vmem>>, vector<1x12x8xbf16>
    %24 = vector.shape_cast %23 : vector<1x12x8xbf16> to vector<12x8xbf16>
    %cst_13 = arith.constant dense<0.000000e+00> : vector<12x128xf32>
    %25 = tpu.matmul %24, %11, %cst_13 {dimension_numbers = #tpu.dot_dimension_numbers<[1], [0], [0], [1], [0, 0, 1, 1], [], []>} : vector<12x8xbf16>, vector<8x128xbf16>, vector<12x128xf32> -> vector<12x128xf32>
    %26 = arith.addf %22, %25 : vector<12x128xf32>
    %c3 = arith.constant 3 : index
    %c0_14 = arith.constant 0 : index
    %c0_15 = arith.constant 0 : index
    %27 = vector.load %arg4[%c3, %c0_14, %c0_15] : memref<4x12x8xbf16, #tpu.memory_space<vmem>>, vector<1x12x8xbf16>
    %28 = vector.shape_cast %27 : vector<1x12x8xbf16> to vector<12x8xbf16>
    %cst_16 = arith.constant dense<0.000000e+00> : vector<12x128xf32>
    %29 = tpu.matmul %28, %15, %cst_16 {dimension_numbers = #tpu.dot_dimension_numbers<[1], [0], [0], [1], [0, 0, 1, 1], [], []>} : vector<12x8xbf16>, vector<8x128xbf16>, vector<12x128xf32> -> vector<12x128xf32>
    %30 = arith.addf %26, %29 : vector<12x128xf32>
    %c0_17 = arith.constant 0 : index
    %c0_18 = arith.constant 0 : index
    %31 = vector.load %arg5[%c0_17, %c0_18] : memref<12x1xf32, #tpu.memory_space<vmem>>, vector<12x1xf32>
    %32 = vector.broadcast %31 : vector<12x1xf32> to vector<12x128xf32>
    %33 = arith.addf %30, %32 : vector<12x128xf32>
    %c0_19 = arith.constant 0 : index
    %c0_20 = arith.constant 0 : index
    %34 = vector.load %arg6[%c0_19, %c0_20] : memref<12x128xf32, #tpu.memory_space<vmem>>, vector<12x128xf32>
    tpu.vector_store %arg6[%c0_19, %c0_20], %33 {strides = array<i32>} : memref<12x128xf32, #tpu.memory_space<vmem>>, vector<12x128xf32>,
    return
  }
  func.func @transform_0(%arg0: i32) -> (i32, i32) {
    %c0_i32 = arith.constant 0 : i32
    %c0_i32_0 = arith.constant 0 : i32
    return %c0_i32, %arg0 : i32, i32
  }
  func.func @transform_1(%arg0: i32) -> (i32, i32) {
    %c1_i32 = arith.constant 1 : i32
    %0 = arith.addi %arg0, %c1_i32 : i32
    %c1_i32_0 = arith.constant 1 : i32
    %1 = arith.muli %0, %c1_i32_0 : i32
    %c0_i32 = arith.constant 0 : i32
    %c0_i32_1 = arith.constant 0 : i32
    return %c0_i32, %1 : i32, i32
  }
  func.func @transform_2(%arg0: i32) -> (i32, i32) {
    %c0_i32 = arith.constant 0 : i32
    %c0_i32_0 = arith.constant 0 : i32
    return %c0_i32, %arg0 : i32, i32
  }
  func.func @transform_3(%arg0: i32) -> (i32, i32, i32) {
    %c0_i32 = arith.constant 0 : i32
    %c0_i32_0 = arith.constant 0 : i32
    %c0_i32_1 = arith.constant 0 : i32
    %c0_i32_2 = arith.constant 0 : i32
    return %c0_i32, %c0_i32_0, %c0_i32_1 : i32, i32, i32
  }
  func.func @transform_4(%arg0: i32) -> (i32, i32) {
    %c0_i32 = arith.constant 0 : i32
    %c0_i32_0 = arith.constant 0 : i32
    %c0_i32_1 = arith.constant 0 : i32
    return %c0_i32, %c0_i32_0 : i32, i32
  }
  func.func @transform_5(%arg0: i32) -> (i32, i32) {
    %c0_i32 = arith.constant 0 : i32
    %c0_i32_0 = arith.constant 0 : i32
    return %c0_i32, %arg0 : i32, i32
  }
}

</mosaic_0001>

<bundles_post_ra>
// kernel: conv_decoder_forward.3
= control target key start
LH: loop header
LB: loop body
LE: loop exit
PB: predicated region body
PF: predicated region fallthrough
CT: control target
= control target key end

     0   :  { %10 = vsyncpa [#allocation3], 0  ;;  %s406_s0 = inlined_call_operand.hbm [shape: f32[2,16], index: 0, kind: input, shape index: {}]   ;;  %s407_s1 = inlined_call_operand.vmem [shape: f32[16,32], index: 1, kind: input, shape index: {}]   ;;  %s408_s2 = inlined_call_operand.vmem [shape: f32[1,32], index: 2, kind: input, shape index: {}]   ;;  %s409_s3 = inlined_call_operand.hbm [shape: f32[32,64], index: 3, kind: input, shape index: {}]   ;;  %s410_s4 = inlined_call_operand.vmem [shape: f32[1,64], index: 4, kind: input, shape index: {}]   ;;  %s411_s5 = inlined_call_operand.vmem [shape: f32[2,64], index: 5, kind: output, shape index: {}]  }
   0x1   :  { %11 = vsyncpa [#allocation5], 0  ;;  %s323_s18 = smov [#allocation2]   ;;  %s324_s20 = smov [#allocation4]  }
   0x2   :  { %s18_s19 = sshll.u32 %s323_s18, 4  ;;  %s31_s21 = sshll.u32 %s324_s20, 4  ;;  %s19_s19 = int_to_ptr.vmem [resolvable:$true] %s18_s19  ;;  %s360_s21 = int_to_ptr.vmem [resolvable:$true] %s31_s21 }
   0x3   :  { %s275_s24 = scalar_lea.hbm %s406_s0, 32 }
   0x4   :  { %p276_p0 = scmp.ne.s32.totalorder %s406_s0, %s275_s24  ;;  %p279_p1 = scmp.lt.u32.totalorder %s275_s24, %s406_s0 }
   0x6   :  { %p281_p2 = pnand %p279_p1, %p276_p0 }
   0x8   :  { %284 = shalt.err (!%p281_p2)
}
   0x9   :  { %s285_s29 = scalar_lea.vmem %s19_s19, 32  ;;  %p290_p4 = scmp.lt.s32.totalorder %s19_s19, %s19_s19 }
   0xa   :  { %p286_p3 = scmp.ne.s32.totalorder %s19_s19, %s285_s29  ;;  %p291_p5 = scmp.lt.s32.totalorder %s285_s29, %s285_s29 }
   0xc   :  { %p292_p6 = por %p291_p5, %p290_p4 }
   0xe   :  { %p293_p7 = pnand %p292_p6, %p286_p3 }
  0x10   :  { %296 = shalt.err (!%p293_p7)
}
  0x11   :  { %21 = dma.hbm_to_vmem [thread:$0]  %s406_s0, 32, %s19_s19, [#allocation3]  }
  0x12   :  { %s297_s9 = scalar_lea.hbm %s409_s3, 512 }
  0x13   :  { %p298_p8 = scmp.ne.s32.totalorder %s409_s3, %s297_s9  ;;  %p301_p9 = scmp.lt.u32.totalorder %s297_s9, %s409_s3 }
  0x15   :  { %p303_p10 = pnand %p301_p9, %p298_p8 }
  0x17   :  { %306 = shalt.err (!%p303_p10)
}
  0x18   :  { %s307_s14 = scalar_lea.vmem %s360_s21, 512  ;;  %p312_p12 = scmp.lt.s32.totalorder %s360_s21, %s360_s21 }
  0x19   :  { %p308_p11 = scmp.ne.s32.totalorder %s360_s21, %s307_s14  ;;  %p313_p13 = scmp.lt.s32.totalorder %s307_s14, %s307_s14 }
  0x1b   :  { %p314_p0 = por %p313_p13, %p312_p12 }
  0x1d   :  { %p315_p1 = pnand %p314_p0, %p308_p11 }
  0x1f   :  { %318 = shalt.err (!%p315_p1)
}
  0x20   :  { %s325_s0 = smov 128   ;;  %s326_s15 = smov 8  }
  0x21   :  { %37 = dma.hbm_to_vmem [thread:$0]  %s409_s3, 512, %s360_s21, [#allocation5], %s325_s0, %s325_s0, %s326_s15  }
  0x22   :  { %319 = dma.done.wait [#allocation3], 32  }
  0x23   :  { %320 = vsyncadd [#allocation3], 4294967264 }
  0x24   :  { %321 = dma.done.wait [#allocation5], 512  }
  0x25   :  { %322 = vsyncadd [#allocation5], 4294966784  ;;  %v327_v0 = vmov 0.0|0.0   ;;  %vm328_vm0 = vmmov 0   ;;  %v329_v1 = vmov 0.0   ;;  %v47_v2 = vld [vmem:[%s407_s1] sm:$0xff] }
  0x26   :  { %259 = vmatprep.subr.bf16.mxu0 %v327_v0  ;;  %245 = vmatprep.mubr.msk.f32.mxu0 %vm328_vm0, %v329_v1  ;;  %v48_v3 = vld [vmem:[%s407_s1 + $0x8] sm:$0xff]  ;;  %v46_v8 = vld [vmem:[#allocation2] sm:$0x3]  ;;  %vm56_vm1 = vcmask 130048   ;;  %v135_v9 = vld [vmem:[#allocation4 + $0x10] sm:$0xff]  ;;  %vm144_vm3 = vcmask 261120  }
  0x27   :  { %262 = vmatprep.subr.bf16.mxu1 %v327_v0  ;;  %256 = vmatprep.mubr.msk.f32.mxu1 %vm328_vm0, %v329_v1  ;;  %v260_v4 = vpack.c.bf16 %v48_v3, %v47_v2  ;;  %v133_v5 = vld [vmem:[#allocation4] sm:$0xff]  ;;  %v134_v6 = vld [vmem:[#allocation4 + $0x8] sm:$0xff]  ;;  %v136_v10 = vld [vmem:[#allocation4 + $0x18] sm:$0xff]  ;;  %vm221_vm5 = vcmask 517120  }
  0x28   :  { %v263_v7 = vpack.c.bf16 %v134_v6, %v133_v5  ;;  %v266_v11 = vpack.c.bf16 %v136_v10, %v135_v9  ;;  %v229_v12 = vld [vmem:[%s408_s2] ss:$0 sm:$0xff] }
  0x29   :  { %261 = vmatpush3.bf16.msra.mxu0 %v260_v4  ;;  %v231_v18 = vld [vmem:[%s410_s4] ss:$0 sm:$0xff] }
  0x2a   :  { %264 = vmatpush3.bf16.msra.mxu1 %v263_v7 }
  0x2b   :  { %265 = vmatprep.subr.bf16.mxu1 %v327_v0 }
  0x2c   :  { %246 = vmatmul.mubr.msk.f32.vlgmr.msra.gmra.mrb[0].mxu0 %vm56_vm1, %v46_v8 }
  0x2e   :  { %267 = vmatpush3.bf16.msra.mxu1 %v266_v11 }
  0xff   :  { %v126_v13 = vpop.f32.mrb[0].mxu0 }
 0x100   :  { %v127_v14 = vadd.f32 %v229_v12, %v126_v13  ;;  %v247_v15 = vpop.f32.mrb[1].mxu0 }
 0x102   :  { %vm130_vm2 = vcmp.ge.f32.partialorder %v127_v14, 0.0  ;;  %v131_v16 = vmul.f32 0.01, %v127_v14 }
 0x104   :  { %v132_v17 = vsel %vm130_vm2, %v127_v14, %v131_v16 }
 0x105   :  { %257 = vmatmul.mubr.msk.f32.vlgmr.msra.gmra.mrb[0].mxu1 %vm144_vm3, %v132_v17 }
 0x1d8   :  { %v214_v19 = vpop.f32.mrb[0].mxu1 }
 0x1d9   :  { %v215_v20 = vadd.f32 %v231_v18, %v214_v19  ;;  %v258_v21 = vpop.f32.mrb[1].mxu1 }
 0x1db   :  { %vm218_vm4 = vcmp.ge.f32.partialorder %v215_v20, 0.0  ;;  %v219_v22 = vmul.f32 0.01, %v215_v20 }
 0x1dd   :  { %v220_v23 = vsel %vm218_vm4, %v215_v20, %v219_v22 }
 0x1de   :  { %222 = vst.msk [vmem:[%s411_s5] sm:$0x3] %vm221_vm5, %v220_v23 }
 0x1df   :  { %227 = vsyncpa [#allocation3], 1 }
 0x1e0   :  { %228 = vsyncpa [#allocation5], 1 }

// kernel: conv_decoder_forward.4
= control target key start
LH: loop header
LB: loop body
LE: loop exit
PB: predicated region body
PF: predicated region fallthrough
CT: control target
= control target key end

     0   :  { %v45_v0 = vlaneseq  ;;  %s598_s20 = smov 1   ;;  %s599_s21 = smov 5   ;;  %vm112_vm0 = vcmask 31744   ;;  %v604_v25 = vmov 0   ;;  %vm110_vm1 = vcmask 1039360   ;;  %s702_s2 = inlined_call_operand.vmem [shape: bf16[2,128], index: 2, kind: input, shape index: {}]   ;;  %s703_s3 = inlined_call_operand.vmem [shape: bf16[4,32,4], index: 3, kind: input, shape index: {}]   ;;  %s704_s0 = inlined_call_operand.vmem [shape: bf16[4,256], index: 0, kind: input, shape index: {}, may-alias: {0,1}]   ;;  %s705_s1 = inlined_call_operand.vmem [shape: bf16[4,256], index: 1, kind: input, shape index: {}, may-alias: {0,1}]   ;;  %s706_s4 = inlined_call_operand.vmem [shape: f32[32,1], index: 4, kind: input, shape index: {}]   ;;  %s707_s5 = inlined_call_operand.vmem [shape: bf16[32,128], index: 5, kind: output, shape index: {}]  }
   0x1   :  { %v40_v1 = vld [vmem:[%s702_s2] sm:$0x1]  ;;  %s600_s22 = smov 4   ;;  %v590_v12 = vld [vmem:[%s703_s3 + $0x10] sm:$0xff]   ;;  %v480_v15 = vld [vmem:[%s705_s1 + $0x2] sm:$0x3]  ;;  %588 = vset.pattern.permute.xlu1 %v604_v25  ;;  %589 = vset.pattern.permute.xlu0 %v604_v25 }
   0x2   :  { %v42_v2 = vshrl.u32 %v40_v1, 16  ;;  %v46_v3 = vshrl.u32 %v45_v0, 7  ;;  %v55_v6 = vpack.i.b16 %v40_v1, %v40_v1  ;;  %543 = vmatprep.mubr.msk.bf16.mxu1 %vm112_vm0, %v590_v12  ;;  %v38_v13 = vld [vmem:[%s704_s0] sm:$0x3]  ;;  %s601_s30 = smov 127   ;;  %s602_s0 = smov 124  }
   0x3   :  { %v592_v14 = vld [vmem:[%s703_s3 + $0x20] sm:$0xff]   ;;  %s603_s6 = smov 123   ;;  %v411_v27 = vld [vmem:[%s706_s4 + $0x8] sm:$0xff]  ;;  %v412_v28 = vld [vmem:[%s706_s4 + $0x10] sm:$0xff]  ;;  %vm119_vm2 = vcmask 1041408   ;;  %vm261_vm3 = vcmask 1014784  }
   0x4   :  { %v43_v4 = vpack.i.b16 %v42_v2, %v42_v2  ;;  %v47_v5 = vsub.s32 0, %v46_v3  ;;  %v71_v7 = vmul.bf16 %v42_v2, %v40_v1  ;;  %555 = vmatprep.mubr.msk.bf16.mxu0 %vm112_vm0, %v592_v14  ;;  %v410_v26 = vld [vmem:[%s706_s4] sm:$0xff]  ;;  %v413_v29 = vld [vmem:[%s706_s4 + $0x18] sm:$0xff]  ;;  %v189_v37 = vsel %vm119_vm2, %v38_v13, 0  ;;  %v593_v41 = vld [vmem:[%s703_s3 + $0x28] sm:$0xff]  }
   0x5   :  { %v591_v34 = vld [vmem:[%s703_s3 + $0x18] sm:$0xff]   ;;  %v594_v38 = vld [vmem:[%s703_s3] sm:$0xff]   ;;  %vm346_vm4 = vcmask 1006592   ;;  %v596_v42 = vld [vmem:[%s703_s3 + $0x30] sm:$0xff]  }
   0x6   :  { %v48_v8 = vrot.slane %v43_v4, %v47_v5  ;;  %v73_v9 = vpack.i.b16 %v71_v7, %v71_v7  ;;  %v60_v10 = vrot.slane %v55_v6, %v47_v5  ;;  %v595_v47 = vld [vmem:[%s703_s3 + $0x8] sm:$0xff]   ;;  %v597_v48 = vld [vmem:[%s703_s3 + $0x38] sm:$0xff]  }
   0x8   :  { %50 = vrot.lane.b32.xlu0 %v48_v8, %s598_s20  ;;  %v78_v11 = vrot.slane %v73_v9, %v47_v5 }
   0xa   :  { %80 = vrot.lane.b32.xlu1 %v78_v11, %s599_s21 }
   0xc   :  { %62 = vrot.lane.b32.xlu0 %v60_v10, %s600_s22 }
  0x7a   :  { %v51_v16 = vpop.permute.xlu0 %50 }
  0x7b   :  { %v53_v17 = vmul.bf16 %v51_v16, %v38_v13  ;;  %v54_v18 = vmul.bf16 %v480_v15, %v51_v16 }
  0x7c   :  { %v81_v20 = vpop.permute.xlu1 %80 }
  0x7d   :  { %108 = vrot.lane.b32.xlu0 %v54_v18, %s601_s30  ;;  %106 = vrot.lane.b32.xlu1 %v53_v17, %s601_s30  ;;  %v83_v23 = vmul.bf16 %v81_v20, %v38_v13  ;;  %v84_v24 = vmul.bf16 %v480_v15, %v81_v20 }
  0x7e   :  { %v63_v19 = vpop.permute.xlu0 %62 }
  0x7f   :  { %v65_v21 = vmul.bf16 %v63_v19, %v38_v13  ;;  %v66_v22 = vmul.bf16 %v480_v15, %v63_v19 }
  0x81   :  { %259 = vrot.lane.b32.xlu0 %v66_v22, %s602_s0  ;;  %257 = vrot.lane.b32.xlu1 %v65_v21, %s602_s0 }
  0x85   :  { %344 = vrot.lane.b32.xlu0 %v84_v24, %s603_s6  ;;  %342 = vrot.lane.b32.xlu1 %v83_v23, %s603_s6 }
  0x89   :  { %416 = vperm.xlu1 %588, %v410_v26   ;;  %421 = vperm.xlu0 %589, %v411_v27  }
  0x8d   :  { %426 = vperm.xlu1 %588, %v412_v28  }
  0x91   :  { %431 = vperm.xlu1 %588, %v413_v29  }
  0xef   :  { %v109_v30 = vpop.permute.xlu0 %108  ;;  %v107_v31 = vpop.permute.xlu1 %106 }
  0xf0   :  { %v111_v32 = vsel %vm110_vm1, %v107_v31, %v109_v30 }
  0xf1   :  { %577 = vmatprep.subr.msk.bf16.mxu1 %vm119_vm2, %v111_v32  ;;  %v121_v33 = vsel %vm119_vm2, %v111_v32, 0 }
  0xf2   :  { %542 = vmatpush3.bf16.msra.mxu1 %v121_v33 }
  0xf3   :  { %v260_v35 = vpop.permute.xlu0 %259  ;;  %v258_v36 = vpop.permute.xlu1 %257  ;;  %578 = vmatprep.subr.msk.bf16.mxu1 %vm119_vm2, %v38_v13 }
  0xf4   :  { %v262_v39 = vsel %vm261_vm3, %v258_v36, %v260_v35 }
  0xf5   :  { %544 = vmatmul.mubr.msk.bf16.vlgmr.msra.gmra.mrb[0].mxu1 %vm112_vm0, %v591_v34  ;;  %579 = vmatprep.subr.msk.bf16.mxu0 %vm119_vm2, %v262_v39  ;;  %v270_v40 = vsel %vm119_vm2, %v262_v39, 0 }
  0xf6   :  { %554 = vmatpush3.bf16.msra.mxu0 %v270_v40  ;;  %548 = vmatpush3.bf16.msra.mxu1 %v189_v37 }
  0xf7   :  { %v345_v43 = vpop.permute.xlu0 %344  ;;  %v343_v44 = vpop.permute.xlu1 %342  ;;  %549 = vmatprep.mubr.msk.bf16.mxu1 %vm112_vm0, %v594_v38 }
  0xf8   :  { %v347_v45 = vsel %vm346_vm4, %v343_v44, %v345_v43 }
  0xf9   :  { %v355_v46 = vsel %vm119_vm2, %v347_v45, 0  ;;  %556 = vmatmul.mubr.msk.bf16.vlgmr.msra.gmra.mrb[0].mxu0 %vm112_vm0, %v593_v41  ;;  %580 = vmatprep.subr.msk.bf16.mxu0 %vm119_vm2, %v347_v45 }
  0xfa   :  { %560 = vmatpush3.bf16.msra.mxu0 %v355_v46  ;;  %561 = vmatprep.mubr.msk.bf16.mxu0 %vm112_vm0, %v596_v42 }
 0x101   :  { %550 = vmatmul.mubr.msk.bf16.vlgmr.msra.gmra.mrb[0].mxu1 %vm112_vm0, %v595_v47 }
 0x105   :  { %562 = vmatmul.mubr.msk.bf16.vlgmr.msra.gmra.mrb[0].mxu0 %vm112_vm0, %v597_v48 }
 0x108   :  { %v417_v49 = vpop.permute.xlu1 %416  ;;  %v422_v63 = vpop.permute.xlu0 %421 }
 0x10c   :  { %v427_v52 = vpop.permute.xlu1 %426 }
 0x110   :  { %v432_v0 = vpop.permute.xlu1 %431 }
 0x1d4   :  { %v551_v50 = vpop.f32.mrb[0].mxu1 }
 0x1d5   :  { %v225_v51 = vpop.f32.mrb[1].mxu1 }
 0x1d6   :  { %v552_v53 = vpop.f32.mrb[2].mxu1 }
 0x1d7   :  { %v228_v54 = vpop.f32.mrb[3].mxu1 }
 0x1d8   :  { %v563_v55 = vpop.f32.mrb[0].mxu0 }
 0x1d9   :  { %v565_v56 = vadd.f32 %v563_v55, %v551_v50  ;;  %v391_v57 = vpop.f32.mrb[1].mxu0 }
 0x1da   :  { %v566_v58 = vadd.f32 %v391_v57, %v225_v51  ;;  %v564_v59 = vpop.f32.mrb[2].mxu0 }
 0x1db   :  { %v436_v60 = vadd.f32 %v565_v56, %v427_v52  ;;  %v567_v61 = vadd.f32 %v564_v59, %v552_v53  ;;  %v394_v62 = vpop.f32.mrb[3].mxu0 }
 0x1dc   :  { %v434_v1 = vadd.f32 %v566_v58, %v417_v49  ;;  %v568_v2 = vadd.f32 %v394_v62, %v228_v54 }
 0x1dd   :  { %v444_v3 = vmul.f32 0.01, %v436_v60  ;;  %v437_v4 = vadd.f32 %v567_v61, %v432_v0  ;;  %vm440_vm5 = vcmp.ge.f32.partialorder %v436_v60, 0.0 }
 0x1de   :  { %v442_v5 = vmul.f32 0.01, %v434_v1  ;;  %v435_v6 = vadd.f32 %v568_v2, %v422_v63  ;;  %vm438_vm6 = vcmp.ge.f32.partialorder %v434_v1, 0.0 }
 0x1df   :  { %vm441_vm7 = vcmp.ge.f32.partialorder %v437_v4, 0.0  ;;  %v445_v7 = vmul.f32 0.01, %v437_v4  ;;  %v448_v9 = vsel %vm440_vm5, %v436_v60, %v444_v3 }
 0x1e0   :  { %vm439_vm8 = vcmp.ge.f32.partialorder %v435_v6, 0.0  ;;  %v443_v8 = vmul.f32 0.01, %v435_v6  ;;  %v446_v12 = vsel %vm438_vm6, %v434_v1, %v442_v5 }
 0x1e1   :  { %v449_v10 = vsel %vm441_vm7, %v437_v4, %v445_v7 }
 0x1e2   :  { %v526_v11 = vpack.c.bf16 %v449_v10, %v448_v9  ;;  %v447_v13 = vsel %vm439_vm8, %v435_v6, %v443_v8 }
 0x1e3   :  { %v521_v14 = vpack.c.bf16 %v447_v13, %v446_v12 }
 0x1e4   :  { %528 = vst [vmem:[%s707_s5 + $0x8] sm:$0xff] %v526_v11  }
 0x1e5   :  { %522 = vst [vmem:[%s707_s5] sm:$0xff] %v521_v14  }

// kernel: conv_decoder_forward.5
= control target key start
LH: loop header
LB: loop body
LE: loop exit
PB: predicated region body
PF: predicated region fallthrough
CT: control target
= control target key end

     0   :  { %v45_v0 = vlaneseq  ;;  %s423_s20 = smov 1   ;;  %s424_s21 = smov 9   ;;  %vm107_vm0 = vcmask 1043456   ;;  %v426_v13 = vmov 0.0   ;;  %vm427_vm1 = vmmov 0   ;;  %s507_s2 = inlined_call_operand.vmem [shape: bf16[2,128], index: 2, kind: input, shape index: {}]   ;;  %s508_s0 = inlined_call_operand.vmem [shape: bf16[8,256], index: 0, kind: input, shape index: {}, may-alias: {0,1}]   ;;  %s509_s3 = inlined_call_operand.vmem [shape: bf16[4,12,8], index: 3, kind: input, shape index: {}]   ;;  %s510_s1 = inlined_call_operand.vmem [shape: bf16[8,256], index: 1, kind: input, shape index: {}, may-alias: {0,1}]   ;;  %s511_s4 = inlined_call_operand.vmem [shape: f32[12,1], index: 4, kind: input, shape index: {}]   ;;  %s512_s5 = inlined_call_operand.vmem [shape: f32[12,128], index: 5, kind: output, shape index: {}]  }
   0x1   :  { %v40_v1 = vld [vmem:[%s507_s2] sm:$0x1]  ;;  %s425_s22 = smov 8   ;;  %384 = vmatprep.subr.bf16.mxu0 %v426_v13  ;;  %390 = vmatprep.subr.bf16.mxu1 %v426_v13  ;;  %vm103_vm2 = vcmask 64512   ;;  %v360_v16 = vld [vmem:[%s510_s1 + $0x4] sm:$0xf] }
   0x2   :  { %v42_v2 = vshrl.u32 %v40_v1, 16  ;;  %v46_v3 = vshrl.u32 %v45_v0, 7  ;;  %v55_v6 = vpack.i.b16 %v40_v1, %v40_v1  ;;  %v38_v12 = vld [vmem:[%s508_s0] sm:$0xf]  ;;  %386 = vmatprep.mubr.msk.bf16.mxu0 %vm427_vm1, %v426_v13  ;;  %392 = vmatprep.mubr.msk.bf16.mxu1 %vm427_vm1, %v426_v13  ;;  %s428_s27 = smov 127   ;;  %v429_v22 = vmov 0  }
   0x3   :  { %v161_v14 = vsel %vm107_vm0, %v38_v12, 0  ;;  %v420_v15 = vld [vmem:[%s509_s3] sm:$0x3f]   ;;  %417 = vset.pattern.permute.xlu1 %v429_v22  ;;  %418 = vset.pattern.permute.xlu0 %v429_v22  ;;  %s430_s28 = smov 120   ;;  %s431_s29 = smov 119   ;;  %vm101_vm3 = vcmask 1039360  }
   0x4   :  { %v43_v4 = vpack.i.b16 %v42_v2, %v42_v2  ;;  %v47_v5 = vsub.s32 0, %v46_v3  ;;  %v71_v7 = vmul.bf16 %v42_v2, %v40_v1  ;;  %391 = vmatpush3.bf16.msra.mxu1 %v161_v14  ;;  %v334_v27 = vld [vmem:[%s511_s4] sm:$0xff]  ;;  %v335_v28 = vld [vmem:[%s511_s4 + $0x8] sm:$0xf]  ;;  %vm218_vm4 = vcmask 982016  }
   0x5   :  { %402 = vmatprep.subr.bf16.mxu1 %v426_v13  ;;  %v419_v33 = vld [vmem:[%s509_s3 + $0x8] sm:$0x3f]   ;;  %vm283_vm5 = vcmask 973824   ;;  %v421_v42 = vld [vmem:[%s509_s3 + $0x10] sm:$0x3f]  }
   0x6   :  { %v48_v8 = vrot.slane %v43_v4, %v47_v5  ;;  %v73_v9 = vpack.i.b16 %v71_v7, %v71_v7  ;;  %v60_v10 = vrot.slane %v55_v6, %v47_v5  ;;  %v422_v43 = vld [vmem:[%s509_s3 + $0x18] sm:$0x3f]  }
   0x7   :  { %393 = vmatmul.mubr.msk.bf16.vlgmr.msra.gmra.mrb[0].mxu1 %vm103_vm2, %v420_v15 }
   0x8   :  { %50 = vrot.lane.b32.xlu0 %v48_v8, %s423_s20  ;;  %v78_v11 = vrot.slane %v73_v9, %v47_v5  ;;  %404 = vmatprep.mubr.msk.bf16.mxu1 %vm427_vm1, %v426_v13 }
   0xa   :  { %80 = vrot.lane.b32.xlu1 %v78_v11, %s424_s21 }
   0xc   :  { %62 = vrot.lane.b32.xlu0 %v60_v10, %s425_s22 }
  0x7a   :  { %v51_v17 = vpop.permute.xlu0 %50 }
  0x7b   :  { %v53_v18 = vmul.bf16 %v51_v17, %v38_v12  ;;  %v54_v19 = vmul.bf16 %v360_v16, %v51_v17 }
  0x7c   :  { %v81_v21 = vpop.permute.xlu1 %80 }
  0x7d   :  { %99 = vrot.lane.b32.xlu0 %v54_v19, %s428_s27  ;;  %97 = vrot.lane.b32.xlu1 %v53_v18, %s428_s27  ;;  %v83_v25 = vmul.bf16 %v81_v21, %v38_v12  ;;  %v84_v26 = vmul.bf16 %v360_v16, %v81_v21 }
  0x7e   :  { %v63_v20 = vpop.permute.xlu0 %62 }
  0x7f   :  { %v65_v23 = vmul.bf16 %v63_v20, %v38_v12  ;;  %v66_v24 = vmul.bf16 %v360_v16, %v63_v20 }
  0x81   :  { %216 = vrot.lane.b32.xlu0 %v66_v24, %s430_s28  ;;  %214 = vrot.lane.b32.xlu1 %v65_v23, %s430_s28 }
  0x85   :  { %281 = vrot.lane.b32.xlu0 %v84_v26, %s431_s29  ;;  %279 = vrot.lane.b32.xlu1 %v83_v25, %s431_s29 }
  0x89   :  { %338 = vperm.xlu1 %417, %v334_v27   ;;  %343 = vperm.xlu0 %418, %v335_v28  }
  0xda   :  { %v197_v44 = vpop.f32.mrb[0].mxu1 }
  0xdb   :  { %v394_v45 = vpop.f32.mrb[1].mxu1 }
  0xdc   :  { %v200_v46 = vpop.f32.mrb[2].mxu1 }
  0xdd   :  { %v395_v47 = vpop.f32.mrb[3].mxu1 }
  0xef   :  { %v100_v29 = vpop.permute.xlu0 %99  ;;  %v98_v30 = vpop.permute.xlu1 %97 }
  0xf0   :  { %v102_v31 = vsel %vm101_vm3, %v98_v30, %v100_v29 }
  0xf1   :  { %v109_v32 = vsel %vm107_vm0, %v102_v31, 0 }
  0xf2   :  { %385 = vmatpush3.bf16.msra.mxu0 %v109_v32 }
  0xf3   :  { %v217_v34 = vpop.permute.xlu0 %216  ;;  %v215_v35 = vpop.permute.xlu1 %214  ;;  %396 = vmatprep.subr.bf16.mxu0 %v426_v13 }
  0xf4   :  { %v219_v36 = vsel %vm218_vm4, %v215_v35, %v217_v34 }
  0xf5   :  { %v224_v37 = vsel %vm107_vm0, %v219_v36, 0  ;;  %387 = vmatmul.mubr.msk.bf16.vlgmr.msra.gmra.mrb[0].mxu0 %vm103_vm2, %v419_v33 }
  0xf6   :  { %397 = vmatpush3.bf16.msra.mxu0 %v224_v37  ;;  %398 = vmatprep.mubr.msk.bf16.mxu0 %vm427_vm1, %v426_v13 }
  0xf7   :  { %v282_v38 = vpop.permute.xlu0 %281  ;;  %v280_v39 = vpop.permute.xlu1 %279 }
  0xf8   :  { %v284_v40 = vsel %vm283_vm5, %v280_v39, %v282_v38 }
  0xf9   :  { %v289_v41 = vsel %vm107_vm0, %v284_v40, 0 }
  0xfa   :  { %403 = vmatpush3.bf16.msra.mxu1 %v289_v41 }
  0xfd   :  { %399 = vmatmul.mubr.msk.bf16.vlgmr.msra.gmra.mrb[4].mxu0 %vm103_vm2, %v421_v42  ;;  %405 = vmatmul.mubr.msk.bf16.vlgmr.msra.gmra.mrb[4].mxu1 %vm103_vm2, %v422_v43 }
 0x108   :  { %v339_v54 = vpop.permute.xlu1 %338  ;;  %v344_v2 = vpop.permute.xlu0 %343 }
 0x1c8   :  { %v145_v48 = vpop.f32.mrb[0].mxu0 }
 0x1c9   :  { %v388_v49 = vpop.f32.mrb[1].mxu0  ;;  %v198_v50 = vadd.f32 %v197_v44, %v145_v48 }
 0x1ca   :  { %v148_v51 = vpop.f32.mrb[2].mxu0 }
 0x1cb   :  { %v389_v52 = vpop.f32.mrb[3].mxu0  ;;  %v201_v53 = vadd.f32 %v200_v46, %v148_v51 }
 0x1d0   :  { %v260_v55 = vpop.f32.mrb[4].mxu0  ;;  %v325_v56 = vpop.f32.mrb[4].mxu1 }
 0x1d1   :  { %v267_v57 = vadd.f32 %v260_v55, %v198_v50  ;;  %v400_v58 = vpop.f32.mrb[5].mxu0  ;;  %v406_v59 = vpop.f32.mrb[5].mxu1 }
 0x1d2   :  { %v263_v60 = vpop.f32.mrb[6].mxu0  ;;  %v328_v61 = vpop.f32.mrb[6].mxu1 }
 0x1d3   :  { %v268_v62 = vadd.f32 %v263_v60, %v201_v53  ;;  %v332_v63 = vadd.f32 %v325_v56, %v267_v57  ;;  %v401_v0 = vpop.f32.mrb[7].mxu0  ;;  %v407_v1 = vpop.f32.mrb[7].mxu1 }
 0x1d5   :  { %v333_v3 = vadd.f32 %v328_v61, %v268_v62  ;;  %v346_v4 = vadd.f32 %v339_v54, %v332_v63 }
 0x1d7   :  { %348 = vst [vmem:[%s512_s5] sm:$0xff] %v346_v4  ;;  %v347_v5 = vadd.f32 %v344_v2, %v333_v3 }
 0x1d9   :  { %349 = vst [vmem:[%s512_s5 + $0x8] sm:$0xf] %v347_v5 }

</bundles_post_ra>
